<compile_context>
chip_gen: v5e
topology: v5e:2x2
jax: 0.10.0
libtpu: 0.0.40
codegen_flags: <defaults>
</compile_context>

<pallas_src>
import jax
import jax.numpy as jnp
import numpy as np
from jax import lax
from jax.experimental import pallas as pl
from jax.experimental.pallas import tpu as pltpu


def _gru_kernel(x_ref, h0_ref, wi_ref, wh_ref, gb_ref, bhn_ref, wo_ref, bo_ref,
                out_ref, gi_ref, hs_ref):
    """Restructured GRU recurrence + batched output projection.

    x_ref  : (T*B, E)   time-major, rows t*B : (t+1)*B are timestep t
    h0_ref : (B, H)
    wi_ref : (E, 3H)    input-side weights, gates packed (r, z, n) on lanes
    wh_ref : (H, 3H)    hidden-side weights, gates packed (r, z, n)
    gb_ref : (1, 3H)    b_ih + [b_hr, b_hz, 0]   (folded biases)
    bhn_ref: (1, H)     b_hn (must stay inside r * (.))
    wo_ref : (H, O)     output projection (pre-transposed)
    bo_ref : (1, O)
    out_ref: (T*B, O)
    gi_ref : VMEM scratch (T*B, 3H)  precomputed input-side gates
    hs_ref : VMEM scratch (T*B, H)   hidden states (projected after the loop)
    """
    TB = x_ref.shape[0]
    B, H = h0_ref.shape
    T = TB // B

    # ---- 1) Batched input-side gate GEMM, hoisted out of the recurrence ----
    gi_ref[...] = jnp.dot(x_ref[...], wi_ref[...],
                          preferred_element_type=jnp.float32) + gb_ref[...]

    # Hoist loop-invariant loads / broadcasts.
    wh = wh_ref[...]                                           # (H, 3H)
    bhn = jnp.broadcast_to(bhn_ref[...], (B, H))               # (B, H)

    # ---- 2) Serial recurrence: one fused (B,H)@(H,3H) matmul per step ----
    def step(t, h):
        row = pl.multiple_of(t * B, B)
        gi_t = gi_ref[pl.ds(row, B), :]                        # (B, 3H)
        gh = jnp.dot(h, wh, preferred_element_type=jnp.float32)  # (B, 3H)
        rz = jax.nn.sigmoid(gi_t[:, :2 * H] + gh[:, :2 * H])   # one EUP pass
        r = rz[:, :H]
        z = rz[:, H:]
        n = jnp.tanh(gi_t[:, 2 * H:] + r * (gh[:, 2 * H:] + bhn))
        h_new = (1.0 - z) * n + z * h                          # (B, H)
        hs_ref[pl.ds(row, B), :] = h_new
        return h_new

    lax.fori_loop(0, T, step, h0_ref[...], unroll=True)

    # ---- 3) Batched output projection + single contiguous store ----
    out_ref[...] = jnp.dot(hs_ref[...], wo_ref[...],
                           preferred_element_type=jnp.float32) + bo_ref[...]


def gru_predictor_forward(x_bte, h0_bh, params):
    """x_bte: (B, T, E) float32, h0_bh: (B, H). Returns (B, T, O)."""
    B, T, E = x_bte.shape
    H = h0_bh.shape[1]
    O = params["w_out"].shape[0]

    # Time-major flattened input: rows t*B : (t+1)*B correspond to timestep t.
    x_flat = jnp.transpose(x_bte, (1, 0, 2)).reshape(T * B, E)

    # Pack gate weights (r, z, n) on the lane axis, pre-transposed so the
    # kernel does (rows, in) @ (in, 3H) matmuls on the MXU.
    wi = jnp.transpose(params["w_ih"])                         # (E, 3H)
    wh = jnp.transpose(params["w_hh"])                         # (H, 3H)

    b_ih = params["b_ih"]                                      # (3H,)
    b_hh = params["b_hh"]                                      # (3H,)
    # Fold b_hr, b_hz into the precomputed input-side bias; b_hn must remain
    # on the hidden side (inside r * (W_hn h + b_hn)).
    gb = (b_ih + jnp.concatenate(
        [b_hh[:2 * H], jnp.zeros((H,), b_hh.dtype)])).reshape(1, 3 * H)
    bhn = b_hh[2 * H:].reshape(1, H)

    wo = jnp.transpose(params["w_out"])                        # (H, O)
    bo = params["b_out"].reshape(1, O)

    vmem = pl.BlockSpec(memory_space=pltpu.MemorySpace.VMEM)

    out_flat = pl.pallas_call(
        _gru_kernel,
        out_shape=jax.ShapeDtypeStruct((T * B, O), jnp.float32),
        in_specs=[vmem] * 8,
        out_specs=vmem,
        scratch_shapes=[
            pltpu.VMEM((T * B, 3 * H), jnp.float32),   # precomputed GI
            pltpu.VMEM((T * B, H), jnp.float32),       # hidden states
        ],
    )(x_flat, h0_bh, wi, wh, gb, bhn, wo, bo)

    # (T*B, O) -> (T, B, O) -> (B, T, O)
    return jnp.transpose(out_flat.reshape(T, B, O), (1, 0, 2))


def _reference_forward(x_bte, h0_bh, params):
    """Pure-JAX reference matching torch.nn.GRU + Linear semantics."""
    H = h0_bh.shape[1]
    w_ih, w_hh = params["w_ih"], params["w_hh"]
    b_ih, b_hh = params["b_ih"], params["b_hh"]
    w_out, b_out = params["w_out"], params["b_out"]

    def cell(h, x_t):
        gi = x_t @ w_ih.T + b_ih
        gh = h @ w_hh.T + b_hh
        r = jax.nn.sigmoid(gi[:, :H] + gh[:, :H])
        z = jax.nn.sigmoid(gi[:, H:2 * H] + gh[:, H:2 * H])
        n = jnp.tanh(gi[:, 2 * H:] + r * gh[:, 2 * H:])
        h_new = (1.0 - z) * n + z * h
        return h_new, h_new

    x_tbe = jnp.transpose(x_bte, (1, 0, 2))
    _, hs = lax.scan(cell, h0_bh, x_tbe)                       # (T, B, H)
    hs = jnp.transpose(hs, (1, 0, 2))                          # (B, T, H)
    return hs @ w_out.T + b_out


if __name__ == "__main__":
    # small shapes consistent with the module
    B, T, E, H, O = 2, 8, 32, 32, 16

    key = jax.random.PRNGKey(0)
    k_x, k_h0, k_wi, k_wh, k_bi, k_bh, k_wo, k_bo = jax.random.split(key, 8)

    x = jax.random.normal(k_x, (B, T, E), dtype=jnp.float32)
    lengths = jnp.full((B,), T, dtype=jnp.int32)
    # TODO(synk): `lengths` is ignored by the PyTorch forward (no packing), so it is ignored here too.

    # init_hidden: uniform(-0.1, 0.1); shape (1, B, H) -> kernel takes (B, H)
    h0 = jax.random.uniform(k_h0, (B, H), minval=-0.1, maxval=0.1, dtype=jnp.float32)

    # deterministic parameter init (PyTorch-style uniform(-1/sqrt(H), 1/sqrt(H)))
    s = 1.0 / np.sqrt(H)
    params = {
        "w_ih": jax.random.uniform(k_wi, (3 * H, E), minval=-s, maxval=s, dtype=jnp.float32),
        "w_hh": jax.random.uniform(k_wh, (3 * H, H), minval=-s, maxval=s, dtype=jnp.float32),
        "b_ih": jax.random.uniform(k_bi, (3 * H,), minval=-s, maxval=s, dtype=jnp.float32),
        "b_hh": jax.random.uniform(k_bh, (3 * H,), minval=-s, maxval=s, dtype=jnp.float32),
        "w_out": jax.random.uniform(k_wo, (O, H), minval=-s, maxval=s, dtype=jnp.float32),
        "b_out": jax.random.uniform(k_bo, (O,), minval=-s, maxval=s, dtype=jnp.float32),
    }

    out = jax.block_until_ready(gru_predictor_forward(x, h0, params))
    ref = jax.block_until_ready(_reference_forward(x, h0, params))

    assert out.shape == (B, T, O)
    np.testing.assert_allclose(np.asarray(out), np.asarray(ref), rtol=1e-5, atol=1e-5)
    print("KERNEL_OK")
</pallas_src>

<mosaic_0001>
module attributes {stable_mosaic.version = 11 : i64} {
  func.func @_gru_kernel(%arg0: memref<16x32xf32, #tpu.memory_space<vmem>>, %arg1: memref<2x32xf32, #tpu.memory_space<vmem>>, %arg2: memref<32x96xf32, #tpu.memory_space<vmem>>, %arg3: memref<32x96xf32, #tpu.memory_space<vmem>>, %arg4: memref<1x96xf32, #tpu.memory_space<vmem>>, %arg5: memref<1x32xf32, #tpu.memory_space<vmem>>, %arg6: memref<32x16xf32, #tpu.memory_space<vmem>>, %arg7: memref<1x16xf32, #tpu.memory_space<vmem>>, %arg8: memref<16x16xf32, #tpu.memory_space<vmem>>, %arg9: memref<16x96xf32, #tpu.memory_space<vmem>>, %arg10: memref<16x32xf32, #tpu.memory_space<vmem>>) attributes {dimension_semantics = [], scalar_prefetch = 0 : i64, scratch_operands = 2 : i64, tpu.core_type = #tpu.core_type<tc>} {
    %c0 = arith.constant 0 : index
    %c0_0 = arith.constant 0 : index
    %0 = vector.load %arg0[%c0, %c0_0] : memref<16x32xf32, #tpu.memory_space<vmem>>, vector<16x32xf32>
    %c0_1 = arith.constant 0 : index
    %c0_2 = arith.constant 0 : index
    %1 = vector.load %arg2[%c0_1, %c0_2] : memref<32x96xf32, #tpu.memory_space<vmem>>, vector<32x96xf32>
    %cst = arith.constant dense<0.000000e+00> : vector<16x96xf32>
    %2 = tpu.matmul %0, %1, %cst {dimension_numbers = #tpu.dot_dimension_numbers<[1], [0], [0], [1], [0, 0, 1, 1], [], []>} : vector<16x32xf32>, vector<32x96xf32>, vector<16x96xf32> -> vector<16x96xf32>
    %c0_3 = arith.constant 0 : index
    %c0_4 = arith.constant 0 : index
    %3 = vector.load %arg4[%c0_3, %c0_4] : memref<1x96xf32, #tpu.memory_space<vmem>>, vector<1x96xf32>
    %4 = vector.broadcast %3 : vector<1x96xf32> to vector<16x96xf32>
    %5 = arith.addf %2, %4 : vector<16x96xf32>
    %c0_5 = arith.constant 0 : index
    %c0_6 = arith.constant 0 : index
    %6 = vector.load %arg9[%c0_5, %c0_6] : memref<16x96xf32, #tpu.memory_space<vmem>>, vector<16x96xf32>
    tpu.vector_store %arg9[%c0_5, %c0_6], %5 {strides = array<i32>} : memref<16x96xf32, #tpu.memory_space<vmem>>, vector<16x96xf32>,
    %c0_7 = arith.constant 0 : index
    %c0_8 = arith.constant 0 : index
    %7 = vector.load %arg3[%c0_7, %c0_8] : memref<32x96xf32, #tpu.memory_space<vmem>>, vector<32x96xf32>
    %c0_9 = arith.constant 0 : index
    %c0_10 = arith.constant 0 : index
    %8 = vector.load %arg5[%c0_9, %c0_10] : memref<1x32xf32, #tpu.memory_space<vmem>>, vector<1x32xf32>
    %9 = vector.shape_cast %8 : vector<1x32xf32> to vector<1x32xf32>
    %10 = vector.broadcast %9 : vector<1x32xf32> to vector<2x32xf32>
    %c0_11 = arith.constant 0 : index
    %c0_12 = arith.constant 0 : index
    %11 = vector.load %arg1[%c0_11, %c0_12] : memref<2x32xf32, #tpu.memory_space<vmem>>, vector<2x32xf32>
    %c0_i32 = arith.constant 0 : i32
    %c2_i32 = arith.constant 2 : i32
    %12 = arith.muli %c0_i32, %c2_i32 : i32
    %13 = tpu.assume_multiple %12, 2 : i32
    %14 = arith.index_cast %13 : i32 to index
    %c0_13 = arith.constant 0 : index
    %15 = vector.load %arg9[%14, %c0_13] : memref<16x96xf32, #tpu.memory_space<vmem>>, vector<2x96xf32>
    %cst_14 = arith.constant dense<0.000000e+00> : vector<2x96xf32>
    %16 = tpu.matmul %11, %7, %cst_14 {dimension_numbers = #tpu.dot_dimension_numbers<[1], [0], [0], [1], [0, 0, 1, 1], [], []>} : vector<2x32xf32>, vector<32x96xf32>, vector<2x96xf32> -> vector<2x96xf32>
    %17 = vector.extract_strided_slice %15 {offsets = [0, 0], sizes = [2, 64], strides = [1, 1]} : vector<2x96xf32> to vector<2x64xf32>
    %18 = vector.extract_strided_slice %16 {offsets = [0, 0], sizes = [2, 64], strides = [1, 1]} : vector<2x96xf32> to vector<2x64xf32>
    %19 = arith.addf %17, %18 : vector<2x64xf32>
    %20 = arith.negf %19 : vector<2x64xf32>
    %21 = math.exp %20 : vector<2x64xf32>
    %cst_15 = arith.constant 1.000000e+00 : f32
    %22 = vector.broadcast %cst_15 : f32 to vector<2x64xf32>
    %23 = arith.addf %22, %21 : vector<2x64xf32>
    %24 = arith.divf %22, %23 : vector<2x64xf32>
    %25 = vector.extract_strided_slice %24 {offsets = [0, 0], sizes = [2, 32], strides = [1, 1]} : vector<2x64xf32> to vector<2x32xf32>
    %26 = vector.extract_strided_slice %24 {offsets = [0, 32], sizes = [2, 32], strides = [1, 1]} : vector<2x64xf32> to vector<2x32xf32>
    %27 = vector.extract_strided_slice %15 {offsets = [0, 64], sizes = [2, 32], strides = [1, 1]} : vector<2x96xf32> to vector<2x32xf32>
    %28 = vector.extract_strided_slice %16 {offsets = [0, 64], sizes = [2, 32], strides = [1, 1]} : vector<2x96xf32> to vector<2x32xf32>
    %29 = arith.addf %28, %10 : vector<2x32xf32>
    %30 = arith.mulf %25, %29 : vector<2x32xf32>
    %31 = arith.addf %27, %30 : vector<2x32xf32>
    %32 = math.tanh %31 : vector<2x32xf32>
    %cst_16 = arith.constant 1.000000e+00 : f32
    %33 = vector.broadcast %cst_16 : f32 to vector<2x32xf32>
    %34 = arith.subf %33, %26 : vector<2x32xf32>
    %35 = arith.mulf %34, %32 : vector<2x32xf32>
    %36 = arith.mulf %26, %11 : vector<2x32xf32>
    %37 = arith.addf %35, %36 : vector<2x32xf32>
    %38 = arith.index_cast %13 : i32 to index
    %c0_17 = arith.constant 0 : index
    %39 = vector.load %arg10[%38, %c0_17] : memref<16x32xf32, #tpu.memory_space<vmem>>, vector<2x32xf32>
    tpu.vector_store %arg10[%38, %c0_17], %37 {strides = array<i32>} : memref<16x32xf32, #tpu.memory_space<vmem>>, vector<2x32xf32>,
    %c1_i32 = arith.constant 1 : i32
    %c2_i32_18 = arith.constant 2 : i32
    %40 = arith.muli %c1_i32, %c2_i32_18 : i32
    %41 = tpu.assume_multiple %40, 2 : i32
    %42 = arith.index_cast %41 : i32 to index
    %c0_19 = arith.constant 0 : index
    %43 = vector.load %arg9[%42, %c0_19] : memref<16x96xf32, #tpu.memory_space<vmem>>, vector<2x96xf32>
    %cst_20 = arith.constant dense<0.000000e+00> : vector<2x96xf32>
    %44 = tpu.matmul %37, %7, %cst_20 {dimension_numbers = #tpu.dot_dimension_numbers<[1], [0], [0], [1], [0, 0, 1, 1], [], []>} : vector<2x32xf32>, vector<32x96xf32>, vector<2x96xf32> -> vector<2x96xf32>
    %45 = vector.extract_strided_slice %43 {offsets = [0, 0], sizes = [2, 64], strides = [1, 1]} : vector<2x96xf32> to vector<2x64xf32>
    %46 = vector.extract_strided_slice %44 {offsets = [0, 0], sizes = [2, 64], strides = [1, 1]} : vector<2x96xf32> to vector<2x64xf32>
    %47 = arith.addf %45, %46 : vector<2x64xf32>
    %48 = arith.negf %47 : vector<2x64xf32>
    %49 = math.exp %48 : vector<2x64xf32>
    %cst_21 = arith.constant 1.000000e+00 : f32
    %50 = vector.broadcast %cst_21 : f32 to vector<2x64xf32>
    %51 = arith.addf %50, %49 : vector<2x64xf32>
    %52 = arith.divf %50, %51 : vector<2x64xf32>
    %53 = vector.extract_strided_slice %52 {offsets = [0, 0], sizes = [2, 32], strides = [1, 1]} : vector<2x64xf32> to vector<2x32xf32>
    %54 = vector.extract_strided_slice %52 {offsets = [0, 32], sizes = [2, 32], strides = [1, 1]} : vector<2x64xf32> to vector<2x32xf32>
    %55 = vector.extract_strided_slice %43 {offsets = [0, 64], sizes = [2, 32], strides = [1, 1]} : vector<2x96xf32> to vector<2x32xf32>
    %56 = vector.extract_strided_slice %44 {offsets = [0, 64], sizes = [2, 32], strides = [1, 1]} : vector<2x96xf32> to vector<2x32xf32>
    %57 = arith.addf %56, %10 : vector<2x32xf32>
    %58 = arith.mulf %53, %57 : vector<2x32xf32>
    %59 = arith.addf %55, %58 : vector<2x32xf32>
    %60 = math.tanh %59 : vector<2x32xf32>
    %cst_22 = arith.constant 1.000000e+00 : f32
    %61 = vector.broadcast %cst_22 : f32 to vector<2x32xf32>
    %62 = arith.subf %61, %54 : vector<2x32xf32>
    %63 = arith.mulf %62, %60 : vector<2x32xf32>
    %64 = arith.mulf %54, %37 : vector<2x32xf32>
    %65 = arith.addf %63, %64 : vector<2x32xf32>
    %66 = arith.index_cast %41 : i32 to index
    %c0_23 = arith.constant 0 : index
    %67 = vector.load %arg10[%66, %c0_23] : memref<16x32xf32, #tpu.memory_space<vmem>>, vector<2x32xf32>
    tpu.vector_store %arg10[%66, %c0_23], %65 {strides = array<i32>} : memref<16x32xf32, #tpu.memory_space<vmem>>, vector<2x32xf32>,
    %c2_i32_24 = arith.constant 2 : i32
    %c2_i32_25 = arith.constant 2 : i32
    %68 = arith.muli %c2_i32_24, %c2_i32_25 : i32
    %69 = tpu.assume_multiple %68, 2 : i32
    %70 = arith.index_cast %69 : i32 to index
    %c0_26 = arith.constant 0 : index
    %71 = vector.load %arg9[%70, %c0_26] : memref<16x96xf32, #tpu.memory_space<vmem>>, vector<2x96xf32>
    %cst_27 = arith.constant dense<0.000000e+00> : vector<2x96xf32>
    %72 = tpu.matmul %65, %7, %cst_27 {dimension_numbers = #tpu.dot_dimension_numbers<[1], [0], [0], [1], [0, 0, 1, 1], [], []>} : vector<2x32xf32>, vector<32x96xf32>, vector<2x96xf32> -> vector<2x96xf32>
    %73 = vector.extract_strided_slice %71 {offsets = [0, 0], sizes = [2, 64], strides = [1, 1]} : vector<2x96xf32> to vector<2x64xf32>
    %74 = vector.extract_strided_slice %72 {offsets = [0, 0], sizes = [2, 64], strides = [1, 1]} : vector<2x96xf32> to vector<2x64xf32>
    %75 = arith.addf %73, %74 : vector<2x64xf32>
    %76 = arith.negf %75 : vector<2x64xf32>
    %77 = math.exp %76 : vector<2x64xf32>
    %cst_28 = arith.constant 1.000000e+00 : f32
    %78 = vector.broadcast %cst_28 : f32 to vector<2x64xf32>
    %79 = arith.addf %78, %77 : vector<2x64xf32>
    %80 = arith.divf %78, %79 : vector<2x64xf32>
    %81 = vector.extract_strided_slice %80 {offsets = [0, 0], sizes = [2, 32], strides = [1, 1]} : vector<2x64xf32> to vector<2x32xf32>
    %82 = vector.extract_strided_slice %80 {offsets = [0, 32], sizes = [2, 32], strides = [1, 1]} : vector<2x64xf32> to vector<2x32xf32>
    %83 = vector.extract_strided_slice %71 {offsets = [0, 64], sizes = [2, 32], strides = [1, 1]} : vector<2x96xf32> to vector<2x32xf32>
    %84 = vector.extract_strided_slice %72 {offsets = [0, 64], sizes = [2, 32], strides = [1, 1]} : vector<2x96xf32> to vector<2x32xf32>
    %85 = arith.addf %84, %10 : vector<2x32xf32>
    %86 = arith.mulf %81, %85 : vector<2x32xf32>
    %87 = arith.addf %83, %86 : vector<2x32xf32>
    %88 = math.tanh %87 : vector<2x32xf32>
    %cst_29 = arith.constant 1.000000e+00 : f32
    %89 = vector.broadcast %cst_29 : f32 to vector<2x32xf32>
    %90 = arith.subf %89, %82 : vector<2x32xf32>
    %91 = arith.mulf %90, %88 : vector<2x32xf32>
    %92 = arith.mulf %82, %65 : vector<2x32xf32>
    %93 = arith.addf %91, %92 : vector<2x32xf32>
    %94 = arith.index_cast %69 : i32 to index
    %c0_30 = arith.constant 0 : index
    %95 = vector.load %arg10[%94, %c0_30] : memref<16x32xf32, #tpu.memory_space<vmem>>, vector<2x32xf32>
    tpu.vector_store %arg10[%94, %c0_30], %93 {strides = array<i32>} : memref<16x32xf32, #tpu.memory_space<vmem>>, vector<2x32xf32>,
    %c3_i32 = arith.constant 3 : i32
    %c2_i32_31 = arith.constant 2 : i32
    %96 = arith.muli %c3_i32, %c2_i32_31 : i32
    %97 = tpu.assume_multiple %96, 2 : i32
    %98 = arith.index_cast %97 : i32 to index
    %c0_32 = arith.constant 0 : index
    %99 = vector.load %arg9[%98, %c0_32] : memref<16x96xf32, #tpu.memory_space<vmem>>, vector<2x96xf32>
    %cst_33 = arith.constant dense<0.000000e+00> : vector<2x96xf32>
    %100 = tpu.matmul %93, %7, %cst_33 {dimension_numbers = #tpu.dot_dimension_numbers<[1], [0], [0], [1], [0, 0, 1, 1], [], []>} : vector<2x32xf32>, vector<32x96xf32>, vector<2x96xf32> -> vector<2x96xf32>
    %101 = vector.extract_strided_slice %99 {offsets = [0, 0], sizes = [2, 64], strides = [1, 1]} : vector<2x96xf32> to vector<2x64xf32>
    %102 = vector.extract_strided_slice %100 {offsets = [0, 0], sizes = [2, 64], strides = [1, 1]} : vector<2x96xf32> to vector<2x64xf32>
    %103 = arith.addf %101, %102 : vector<2x64xf32>
    %104 = arith.negf %103 : vector<2x64xf32>
    %105 = math.exp %104 : vector<2x64xf32>
    %cst_34 = arith.constant 1.000000e+00 : f32
    %106 = vector.broadcast %cst_34 : f32 to vector<2x64xf32>
    %107 = arith.addf %106, %105 : vector<2x64xf32>
    %108 = arith.divf %106, %107 : vector<2x64xf32>
    %109 = vector.extract_strided_slice %108 {offsets = [0, 0], sizes = [2, 32], strides = [1, 1]} : vector<2x64xf32> to vector<2x32xf32>
    %110 = vector.extract_strided_slice %108 {offsets = [0, 32], sizes = [2, 32], strides = [1, 1]} : vector<2x64xf32> to vector<2x32xf32>
    %111 = vector.extract_strided_slice %99 {offsets = [0, 64], sizes = [2, 32], strides = [1, 1]} : vector<2x96xf32> to vector<2x32xf32>
    %112 = vector.extract_strided_slice %100 {offsets = [0, 64], sizes = [2, 32], strides = [1, 1]} : vector<2x96xf32> to vector<2x32xf32>
    %113 = arith.addf %112, %10 : vector<2x32xf32>
    %114 = arith.mulf %109, %113 : vector<2x32xf32>
    %115 = arith.addf %111, %114 : vector<2x32xf32>
    %116 = math.tanh %115 : vector<2x32xf32>
    %cst_35 = arith.constant 1.000000e+00 : f32
    %117 = vector.broadcast %cst_35 : f32 to vector<2x32xf32>
    %118 = arith.subf %117, %110 : vector<2x32xf32>
    %119 = arith.mulf %118, %116 : vector<2x32xf32>
    %120 = arith.mulf %110, %93 : vector<2x32xf32>
    %121 = arith.addf %119, %120 : vector<2x32xf32>
    %122 = arith.index_cast %97 : i32 to index
    %c0_36 = arith.constant 0 : index
    %123 = vector.load %arg10[%122, %c0_36] : memref<16x32xf32, #tpu.memory_space<vmem>>, vector<2x32xf32>
    tpu.vector_store %arg10[%122, %c0_36], %121 {strides = array<i32>} : memref<16x32xf32, #tpu.memory_space<vmem>>, vector<2x32xf32>,
    %c4_i32 = arith.constant 4 : i32
    %c2_i32_37 = arith.constant 2 : i32
    %124 = arith.muli %c4_i32, %c2_i32_37 : i32
    %125 = tpu.assume_multiple %124, 2 : i32
    %126 = arith.index_cast %125 : i32 to index
    %c0_38 = arith.constant 0 : index
    %127 = vector.load %arg9[%126, %c0_38] : memref<16x96xf32, #tpu.memory_space<vmem>>, vector<2x96xf32>
    %cst_39 = arith.constant dense<0.000000e+00> : vector<2x96xf32>
    %128 = tpu.matmul %121, %7, %cst_39 {dimension_numbers = #tpu.dot_dimension_numbers<[1], [0], [0], [1], [0, 0, 1, 1], [], []>} : vector<2x32xf32>, vector<32x96xf32>, vector<2x96xf32> -> vector<2x96xf32>
    %129 = vector.extract_strided_slice %127 {offsets = [0, 0], sizes = [2, 64], strides = [1, 1]} : vector<2x96xf32> to vector<2x64xf32>
    %130 = vector.extract_strided_slice %128 {offsets = [0, 0], sizes = [2, 64], strides = [1, 1]} : vector<2x96xf32> to vector<2x64xf32>
    %131 = arith.addf %129, %130 : vector<2x64xf32>
    %132 = arith.negf %131 : vector<2x64xf32>
    %133 = math.exp %132 : vector<2x64xf32>
    %cst_40 = arith.constant 1.000000e+00 : f32
    %134 = vector.broadcast %cst_40 : f32 to vector<2x64xf32>
    %135 = arith.addf %134, %133 : vector<2x64xf32>
    %136 = arith.divf %134, %135 : vector<2x64xf32>
    %137 = vector.extract_strided_slice %136 {offsets = [0, 0], sizes = [2, 32], strides = [1, 1]} : vector<2x64xf32> to vector<2x32xf32>
    %138 = vector.extract_strided_slice %136 {offsets = [0, 32], sizes = [2, 32], strides = [1, 1]} : vector<2x64xf32> to vector<2x32xf32>
    %139 = vector.extract_strided_slice %127 {offsets = [0, 64], sizes = [2, 32], strides = [1, 1]} : vector<2x96xf32> to vector<2x32xf32>
    %140 = vector.extract_strided_slice %128 {offsets = [0, 64], sizes = [2, 32], strides = [1, 1]} : vector<2x96xf32> to vector<2x32xf32>
    %141 = arith.addf %140, %10 : vector<2x32xf32>
    %142 = arith.mulf %137, %141 : vector<2x32xf32>
    %143 = arith.addf %139, %142 : vector<2x32xf32>
    %144 = math.tanh %143 : vector<2x32xf32>
    %cst_41 = arith.constant 1.000000e+00 : f32
    %145 = vector.broadcast %cst_41 : f32 to vector<2x32xf32>
    %146 = arith.subf %145, %138 : vector<2x32xf32>
    %147 = arith.mulf %146, %144 : vector<2x32xf32>
    %148 = arith.mulf %138, %121 : vector<2x32xf32>
    %149 = arith.addf %147, %148 : vector<2x32xf32>
    %150 = arith.index_cast %125 : i32 to index
    %c0_42 = arith.constant 0 : index
    %151 = vector.load %arg10[%150, %c0_42] : memref<16x32xf32, #tpu.memory_space<vmem>>, vector<2x32xf32>
    tpu.vector_store %arg10[%150, %c0_42], %149 {strides = array<i32>} : memref<16x32xf32, #tpu.memory_space<vmem>>, vector<2x32xf32>,
    %c5_i32 = arith.constant 5 : i32
    %c2_i32_43 = arith.constant 2 : i32
    %152 = arith.muli %c5_i32, %c2_i32_43 : i32
    %153 = tpu.assume_multiple %152, 2 : i32
    %154 = arith.index_cast %153 : i32 to index
    %c0_44 = arith.constant 0 : index
    %155 = vector.load %arg9[%154, %c0_44] : memref<16x96xf32, #tpu.memory_space<vmem>>, vector<2x96xf32>
    %cst_45 = arith.constant dense<0.000000e+00> : vector<2x96xf32>
    %156 = tpu.matmul %149, %7, %cst_45 {dimension_numbers = #tpu.dot_dimension_numbers<[1], [0], [0], [1], [0, 0, 1, 1], [], []>} : vector<2x32xf32>, vector<32x96xf32>, vector<2x96xf32> -> vector<2x96xf32>
    %157 = vector.extract_strided_slice %155 {offsets = [0, 0], sizes = [2, 64], strides = [1, 1]} : vector<2x96xf32> to vector<2x64xf32>
    %158 = vector.extract_strided_slice %156 {offsets = [0, 0], sizes = [2, 64], strides = [1, 1]} : vector<2x96xf32> to vector<2x64xf32>
    %159 = arith.addf %157, %158 : vector<2x64xf32>
    %160 = arith.negf %159 : vector<2x64xf32>
    %161 = math.exp %160 : vector<2x64xf32>
    %cst_46 = arith.constant 1.000000e+00 : f32
    %162 = vector.broadcast %cst_46 : f32 to vector<2x64xf32>
    %163 = arith.addf %162, %161 : vector<2x64xf32>
    %164 = arith.divf %162, %163 : vector<2x64xf32>
    %165 = vector.extract_strided_slice %164 {offsets = [0, 0], sizes = [2, 32], strides = [1, 1]} : vector<2x64xf32> to vector<2x32xf32>
    %166 = vector.extract_strided_slice %164 {offsets = [0, 32], sizes = [2, 32], strides = [1, 1]} : vector<2x64xf32> to vector<2x32xf32>
    %167 = vector.extract_strided_slice %155 {offsets = [0, 64], sizes = [2, 32], strides = [1, 1]} : vector<2x96xf32> to vector<2x32xf32>
    %168 = vector.extract_strided_slice %156 {offsets = [0, 64], sizes = [2, 32], strides = [1, 1]} : vector<2x96xf32> to vector<2x32xf32>
    %169 = arith.addf %168, %10 : vector<2x32xf32>
    %170 = arith.mulf %165, %169 : vector<2x32xf32>
    %171 = arith.addf %167, %170 : vector<2x32xf32>
    %172 = math.tanh %171 : vector<2x32xf32>
    %cst_47 = arith.constant 1.000000e+00 : f32
    %173 = vector.broadcast %cst_47 : f32 to vector<2x32xf32>
    %174 = arith.subf %173, %166 : vector<2x32xf32>
    %175 = arith.mulf %174, %172 : vector<2x32xf32>
    %176 = arith.mulf %166, %149 : vector<2x32xf32>
    %177 = arith.addf %175, %176 : vector<2x32xf32>
    %178 = arith.index_cast %153 : i32 to index
    %c0_48 = arith.constant 0 : index
    %179 = vector.load %arg10[%178, %c0_48] : memref<16x32xf32, #tpu.memory_space<vmem>>, vector<2x32xf32>
    tpu.vector_store %arg10[%178, %c0_48], %177 {strides = array<i32>} : memref<16x32xf32, #tpu.memory_space<vmem>>, vector<2x32xf32>,
    %c6_i32 = arith.constant 6 : i32
    %c2_i32_49 = arith.constant 2 : i32
    %180 = arith.muli %c6_i32, %c2_i32_49 : i32
    %181 = tpu.assume_multiple %180, 2 : i32
    %182 = arith.index_cast %181 : i32 to index
    %c0_50 = arith.constant 0 : index
    %183 = vector.load %arg9[%182, %c0_50] : memref<16x96xf32, #tpu.memory_space<vmem>>, vector<2x96xf32>
    %cst_51 = arith.constant dense<0.000000e+00> : vector<2x96xf32>
    %184 = tpu.matmul %177, %7, %cst_51 {dimension_numbers = #tpu.dot_dimension_numbers<[1], [0], [0], [1], [0, 0, 1, 1], [], []>} : vector<2x32xf32>, vector<32x96xf32>, vector<2x96xf32> -> vector<2x96xf32>
    %185 = vector.extract_strided_slice %183 {offsets = [0, 0], sizes = [2, 64], strides = [1, 1]} : vector<2x96xf32> to vector<2x64xf32>
    %186 = vector.extract_strided_slice %184 {offsets = [0, 0], sizes = [2, 64], strides = [1, 1]} : vector<2x96xf32> to vector<2x64xf32>
    %187 = arith.addf %185, %186 : vector<2x64xf32>
    %188 = arith.negf %187 : vector<2x64xf32>
    %189 = math.exp %188 : vector<2x64xf32>
    %cst_52 = arith.constant 1.000000e+00 : f32
    %190 = vector.broadcast %cst_52 : f32 to vector<2x64xf32>
    %191 = arith.addf %190, %189 : vector<2x64xf32>
    %192 = arith.divf %190, %191 : vector<2x64xf32>
    %193 = vector.extract_strided_slice %192 {offsets = [0, 0], sizes = [2, 32], strides = [1, 1]} : vector<2x64xf32> to vector<2x32xf32>
    %194 = vector.extract_strided_slice %192 {offsets = [0, 32], sizes = [2, 32], strides = [1, 1]} : vector<2x64xf32> to vector<2x32xf32>
    %195 = vector.extract_strided_slice %183 {offsets = [0, 64], sizes = [2, 32], strides = [1, 1]} : vector<2x96xf32> to vector<2x32xf32>
    %196 = vector.extract_strided_slice %184 {offsets = [0, 64], sizes = [2, 32], strides = [1, 1]} : vector<2x96xf32> to vector<2x32xf32>
    %197 = arith.addf %196, %10 : vector<2x32xf32>
    %198 = arith.mulf %193, %197 : vector<2x32xf32>
    %199 = arith.addf %195, %198 : vector<2x32xf32>
    %200 = math.tanh %199 : vector<2x32xf32>
    %cst_53 = arith.constant 1.000000e+00 : f32
    %201 = vector.broadcast %cst_53 : f32 to vector<2x32xf32>
    %202 = arith.subf %201, %194 : vector<2x32xf32>
    %203 = arith.mulf %202, %200 : vector<2x32xf32>
    %204 = arith.mulf %194, %177 : vector<2x32xf32>
    %205 = arith.addf %203, %204 : vector<2x32xf32>
    %206 = arith.index_cast %181 : i32 to index
    %c0_54 = arith.constant 0 : index
    %207 = vector.load %arg10[%206, %c0_54] : memref<16x32xf32, #tpu.memory_space<vmem>>, vector<2x32xf32>
    tpu.vector_store %arg10[%206, %c0_54], %205 {strides = array<i32>} : memref<16x32xf32, #tpu.memory_space<vmem>>, vector<2x32xf32>,
    %c7_i32 = arith.constant 7 : i32
    %c2_i32_55 = arith.constant 2 : i32
    %208 = arith.muli %c7_i32, %c2_i32_55 : i32
    %209 = tpu.assume_multiple %208, 2 : i32
    %210 = arith.index_cast %209 : i32 to index
    %c0_56 = arith.constant 0 : index
    %211 = vector.load %arg9[%210, %c0_56] : memref<16x96xf32, #tpu.memory_space<vmem>>, vector<2x96xf32>
    %cst_57 = arith.constant dense<0.000000e+00> : vector<2x96xf32>
    %212 = tpu.matmul %205, %7, %cst_57 {dimension_numbers = #tpu.dot_dimension_numbers<[1], [0], [0], [1], [0, 0, 1, 1], [], []>} : vector<2x32xf32>, vector<32x96xf32>, vector<2x96xf32> -> vector<2x96xf32>
    %213 = vector.extract_strided_slice %211 {offsets = [0, 0], sizes = [2, 64], strides = [1, 1]} : vector<2x96xf32> to vector<2x64xf32>
    %214 = vector.extract_strided_slice %212 {offsets = [0, 0], sizes = [2, 64], strides = [1, 1]} : vector<2x96xf32> to vector<2x64xf32>
    %215 = arith.addf %213, %214 : vector<2x64xf32>
    %216 = arith.negf %215 : vector<2x64xf32>
    %217 = math.exp %216 : vector<2x64xf32>
    %cst_58 = arith.constant 1.000000e+00 : f32
    %218 = vector.broadcast %cst_58 : f32 to vector<2x64xf32>
    %219 = arith.addf %218, %217 : vector<2x64xf32>
    %220 = arith.divf %218, %219 : vector<2x64xf32>
    %221 = vector.extract_strided_slice %220 {offsets = [0, 0], sizes = [2, 32], strides = [1, 1]} : vector<2x64xf32> to vector<2x32xf32>
    %222 = vector.extract_strided_slice %220 {offsets = [0, 32], sizes = [2, 32], strides = [1, 1]} : vector<2x64xf32> to vector<2x32xf32>
    %223 = vector.extract_strided_slice %211 {offsets = [0, 64], sizes = [2, 32], strides = [1, 1]} : vector<2x96xf32> to vector<2x32xf32>
    %224 = vector.extract_strided_slice %212 {offsets = [0, 64], sizes = [2, 32], strides = [1, 1]} : vector<2x96xf32> to vector<2x32xf32>
    %225 = arith.addf %224, %10 : vector<2x32xf32>
    %226 = arith.mulf %221, %225 : vector<2x32xf32>
    %227 = arith.addf %223, %226 : vector<2x32xf32>
    %228 = math.tanh %227 : vector<2x32xf32>
    %cst_59 = arith.constant 1.000000e+00 : f32
    %229 = vector.broadcast %cst_59 : f32 to vector<2x32xf32>
    %230 = arith.subf %229, %222 : vector<2x32xf32>
    %231 = arith.mulf %230, %228 : vector<2x32xf32>
    %232 = arith.mulf %222, %205 : vector<2x32xf32>
    %233 = arith.addf %231, %232 : vector<2x32xf32>
    %234 = arith.index_cast %209 : i32 to index
    %c0_60 = arith.constant 0 : index
    %235 = vector.load %arg10[%234, %c0_60] : memref<16x32xf32, #tpu.memory_space<vmem>>, vector<2x32xf32>
    tpu.vector_store %arg10[%234, %c0_60], %233 {strides = array<i32>} : memref<16x32xf32, #tpu.memory_space<vmem>>, vector<2x32xf32>,
    %c8_i32 = arith.constant 8 : i32
    %c0_61 = arith.constant 0 : index
    %c0_62 = arith.constant 0 : index
    %236 = vector.load %arg10[%c0_61, %c0_62] : memref<16x32xf32, #tpu.memory_space<vmem>>, vector<16x32xf32>
    %c0_63 = arith.constant 0 : index
    %c0_64 = arith.constant 0 : index
    %237 = vector.load %arg6[%c0_63, %c0_64] : memref<32x16xf32, #tpu.memory_space<vmem>>, vector<32x16xf32>
    %cst_65 = arith.constant dense<0.000000e+00> : vector<16x16xf32>
    %238 = tpu.matmul %236, %237, %cst_65 {dimension_numbers = #tpu.dot_dimension_numbers<[1], [0], [0], [1], [0, 0, 1, 1], [], []>} : vector<16x32xf32>, vector<32x16xf32>, vector<16x16xf32> -> vector<16x16xf32>
    %c0_66 = arith.constant 0 : index
    %c0_67 = arith.constant 0 : index
    %239 = vector.load %arg7[%c0_66, %c0_67] : memref<1x16xf32, #tpu.memory_space<vmem>>, vector<1x16xf32>
    %240 = vector.broadcast %239 : vector<1x16xf32> to vector<16x16xf32>
    %241 = arith.addf %238, %240 : vector<16x16xf32>
    %c0_68 = arith.constant 0 : index
    %c0_69 = arith.constant 0 : index
    %242 = vector.load %arg8[%c0_68, %c0_69] : memref<16x16xf32, #tpu.memory_space<vmem>>, vector<16x16xf32>
    tpu.vector_store %arg8[%c0_68, %c0_69], %241 {strides = array<i32>} : memref<16x16xf32, #tpu.memory_space<vmem>>, vector<16x16xf32>,
    return
  }
}

</mosaic_0001>

<bundles_post_ra>
// kernel: tpu_custom_call.1
= control target key start
LH: loop header
LB: loop body
LE: loop exit
PB: predicated region body
PF: predicated region fallthrough
CT: control target
= control target key end

     0   :  { %13 = vsyncpa [#allocation5], 0  ;;  %s1118_s0 = inlined_call_operand.vmem [shape: f32[16,32], index: 0, kind: input, shape index: {}]   ;;  %s1119_s1 = inlined_call_operand.hbm [shape: f32[2,32], index: 1, kind: input, shape index: {}]   ;;  %s1120_s2 = inlined_call_operand.vmem [shape: f32[32,96], index: 2, kind: input, shape index: {}]   ;;  %s1121_s3 = inlined_call_operand.hbm [shape: f32[32,96], index: 3, kind: input, shape index: {}]   ;;  %s1122_s4 = inlined_call_operand.vmem [shape: f32[1,96], index: 4, kind: input, shape index: {}]   ;;  %s1123_s5 = inlined_call_operand.vmem [shape: f32[1,32], index: 5, kind: input, shape index: {}]   ;;  %s1124_s6 = inlined_call_operand.vmem [shape: f32[32,16], index: 6, kind: input, shape index: {}]   ;;  %s1125_s7 = inlined_call_operand.vmem [shape: f32[1,16], index: 7, kind: input, shape index: {}]   ;;  %s1126_s8 = inlined_call_operand.hbm [shape: f32[16,16], index: 8, kind: output, shape index: {}]  }
   0x1   :  { %14 = vsyncpa [#allocation8], 0 }
   0x2   :  { %15 = vsyncpa [#allocation6], 0  ;;  %s23_s29 = sshll.u32 %s1119_s1, 4  ;;  %s896_s30 = smov [#allocation4]   ;;  %s24_s29 = int_to_ptr.hbm [resolvable:$true] %s23_s29 }
   0x3   :  { %s25_s9 = sshll.u32 %s896_s30, 4  ;;  %s35_s12 = sshll.u32 %s1121_s3, 4  ;;  %s26_s9 = int_to_ptr.vmem [resolvable:$true] %s25_s9  ;;  %s36_s12 = int_to_ptr.hbm [resolvable:$true] %s35_s12 }
   0x4   :  { %28 = dma.hbm_to_vmem [thread:$0]  %s24_s29, 32, %s26_s9, [#allocation5]  }
   0x5   :  { %s897_s13 = smov [#allocation7]   ;;  %s898_s15 = smov 128  }
   0x6   :  { %s37_s14 = sshll.u32 %s897_s13, 4  ;;  %s899_s16 = smov 8   ;;  %s38_s14 = int_to_ptr.vmem [resolvable:$true] %s37_s14 }
   0x7   :  { %43 = dma.hbm_to_vmem [thread:$0]  %s36_s12, 512, %s38_s14, [#allocation8], %s898_s15, %s898_s15, %s899_s16  }
   0x8   :  { %890 = dma.done.wait [#allocation5], 32  }
   0x9   :  { %891 = vsyncadd [#allocation5], 4294967264 }
   0xa   :  { %892 = dma.done.wait [#allocation8], 512  }
   0xb   :  { %893 = vsyncadd [#allocation8], 4294966784  ;;  %v65_v0 = vld [vmem:[%s1120_s2 + $0x18] sm:$0xff]  ;;  %v64_v2 = vld [vmem:[%s1120_s2 + $0x10] sm:$0xff]  ;;  %s900_s25 = smov 32   ;;  %vm70_vm0 = vcmask 261120  }
   0xc   :  { %v961_v1 = vld [vmem:[#allocation7 + $0x18] sm:$0xff]  ;;  %89 = vmatpush.msra.mxu0 %v65_v0  ;;  %v967_v3 = vld [vmem:[#allocation7 + $0x10] sm:$0xff]  ;;  %v63_v4 = vld [vmem:[%s1120_s2 + $0x8] sm:$0xff]  ;;  %s901_s27 = smov 64   ;;  %vm100_vm1 = vcmask 785408   ;;  %vm185_vm6 = vcmask 254976  }
   0xd   :  { %127 = vmatpush.msra.mxu1 %v961_v1  ;;  %v972_v5 = vld [vmem:[#allocation7 + $0x8] sm:$0xff]  ;;  %v62_v6 = vld [vmem:[%s1120_s2] sm:$0xff]  ;;  %203 = vmatpush.msra.mxu3 %v961_v1  ;;  %s725_s20 = sshll.u32 %s1126_s8, 4  ;;  %s726_s20 = int_to_ptr.hbm [resolvable:$true] %s725_s20 }
   0xe   :  { %413 = vmatpush.msra.mxu2 %v961_v1  ;;  %90 = vmatpush.msra.mxu0 %v64_v2  ;;  %v110_v7 = vld [vmem:[#allocation4] sm:$0x3]  ;;  %v983_v9 = vld [vmem:[#allocation7] sm:$0xff] }
   0xf   :  { %128 = vmatpush.msra.mxu1 %v967_v3  ;;  %v767_v8 = vld [vmem:[%s1123_s5] ss:$0 sm:$0xff]  ;;  %176 = vrot.lane.b32.xlu2 %v110_v7, %s900_s25 }
  0x10   :  { %204 = vmatpush.msra.mxu3 %v967_v3  ;;  %91 = vmatpush.msra.mxu0 %v63_v4  ;;  %v60_v10 = vld [vmem:[%s1118_s0] sm:$0xff] }
  0x11   :  { %129 = vmatpush.msra.mxu1 %v972_v5  ;;  %155 = vrot.lane.b32.xlu0 %v767_v8, %s901_s27  ;;  %v1018_v11 = vld [vmem:[%s1122_s4] ss:$0 sm:$0xff]  ;;  %s902_s4 = smov 96  }
  0x12   :  { %205 = vmatpush.msra.mxu3 %v972_v5  ;;  %92 = vmatpush.msra.mxu0 %v62_v6 }
  0x13   :  { %130 = vmatpush.msra.mxu1 %v983_v9  ;;  %739 = vmatmul.msk.f32.vlgmr.msra.gmra.mxu0 %vm70_vm0, %v60_v10 }
  0x14   :  { %741 = vmatmul.msk.f32.vlgmr.msra.gmra.mxu1 %vm70_vm0, %v110_v7  ;;  %206 = vmatpush.msra.mxu3 %v983_v9 }
  0x15   :  { %343 = vmatpush.msrb.mxu1 %v961_v1  ;;  %414 = vmatpush.msra.mxu2 %v967_v3 }
  0x16   :  { %273 = vmatpush.msrb.mxu3 %v961_v1  ;;  %553 = vmatpush.msrb.mxu0 %v961_v1 }
  0x17   :  { %344 = vmatpush.msrb.mxu1 %v967_v3  ;;  %415 = vmatpush.msra.mxu2 %v972_v5 }
  0x18   :  { %274 = vmatpush.msrb.mxu3 %v967_v3  ;;  %554 = vmatpush.msrb.mxu0 %v967_v3 }
  0x19   :  { %345 = vmatpush.msrb.mxu1 %v972_v5  ;;  %416 = vmatpush.msra.mxu2 %v983_v9 }
  0x1a   :  { %275 = vmatpush.msrb.mxu3 %v972_v5  ;;  %555 = vmatpush.msrb.mxu0 %v972_v5 }
  0x1b   :  { %346 = vmatpush.msrb.mxu1 %v983_v9 }
  0x1c   :  { %276 = vmatpush.msrb.mxu3 %v983_v9  ;;  %556 = vmatpush.msrb.mxu0 %v983_v9 }
  0x1d   :  { %623 = vmatpush.msra.mxu1 %v961_v1 }
  0x1f   :  { %624 = vmatpush.msra.mxu1 %v967_v3 }
  0x21   :  { %625 = vmatpush.msra.mxu1 %v972_v5 }
  0x23   :  { %626 = vmatpush.msra.mxu1 %v983_v9 }
  0x69   :  { %v177_v37 = vpop.permute.xlu2 %176 }
  0x83   :  { %v1020_v12 = vpop.permute.xlu0 %155 }
  0x90   :  { %v94_v13 = vpop.f32.mrf.mxu0 }
  0x91   :  { %v132_v14 = vpop.f32.mrf.mxu1  ;;  %v95_v15 = vadd.f32 %v1018_v11, %v94_v13 }
  0x92   :  { %v158_v16 = vadd.f32 %v1020_v12, %v132_v14 }
  0x93   :  { %101 = vst.msk [vmem:[#allocation2] sm:$0xff] %vm100_vm1, %v95_v15 }
  0x94   :  { %160 = vrot.lane.b32.xlu0 %v158_v16, %s901_s27 }
  0x9a   :  { %v111_v17 = vld [vmem:[#allocation2] sm:$0x3]  ;;  %v188_v46 = vld [vmem:[#allocation2 + $0x2] sm:$0x3]  ;;  %v258_v10 = vld [vmem:[#allocation2 + $0x4] sm:$0x3] }
  0x9b   :  { %v135_v18 = vadd.f32 %v132_v14, %v111_v17 }
  0x9d   :  { %v742_v19 = vmul.f32 -1.442695, %v135_v18 }
  0x9f   :  { %770 = vpow2.f32 %v742_v19 }
  0xa5   :  { %v771_v20 = vpop.eup %770 }
  0xa6   :  { %v139_v21 = vadd.f32 1.0, %v771_v20 }
  0xa8   :  { %772 = vrcp.f32 %v139_v21  ;;  %v151_v27 = vand.u32 2147483648, %v139_v21  ;;  %vm145_vm3 = vweird.f32 %v139_v21  ;;  %v149_v28 = vand.u32 2147483647, %v139_v21 }
  0xaa   :  { %v152_v30 = vor.u32 1.1754944e-38, %v151_v27  ;;  %vm150_vm5 = vcmp.eq.f32.partialorder %v149_v28, 8.507059e+37 }
  0xae   :  { %v773_v22 = vpop.eup %772 }
  0xaf   :  { %v141_v23 = vmul.f32 %v773_v22, %v139_v21  ;;  %vm146_vm2 = vweird.f32 %v773_v22 }
  0xb0   :  { %vm147_vm4 = vmor %vm145_vm3, %vm146_vm2 }
  0xb1   :  { %v142_v24 = vsub.f32 1.0, %v141_v23 }
  0xb3   :  { %v143_v25 = vmul.f32 %v773_v22, %v142_v24 }
  0xb5   :  { %v144_v26 = vadd.f32 %v773_v22, %v143_v25 }
  0xb7   :  { %v148_v29 = vsel %vm147_vm4, %v773_v22, %v144_v26 }
  0xb8   :  { %v153_v31 = vsel %vm150_vm5, %v152_v30, %v148_v29  ;;  %vm716_vm5 = vcmask 130048  }
  0xb9   :  { %v170_v38 = vsub.f32 1.0, %v153_v31  ;;  %v179_v40 = vmul.f32 %v177_v37, %v153_v31 }
 0x106   :  { %v161_v32 = vpop.permute.xlu0 %160 }
 0x107   :  { %v163_v33 = vmul.f32 %v161_v32, %v153_v31 }
 0x109   :  { %165 = vrot.lane.b32.xlu1 %v163_v33, %s901_s27 }
 0x17b   :  { %v166_v34 = vpop.permute.xlu1 %165 }
 0x17c   :  { %v168_v35 = vadd.f32 %v166_v34, %v111_v17 }
 0x17e   :  { %774 = vtanh.f32 %v168_v35 }
 0x184   :  { %v775_v36 = vpop.eup %774 }
 0x185   :  { %172 = vrot.lane.b32.xlu1 %v775_v36, %s902_s4 }
 0x1f7   :  { %v173_v39 = vpop.permute.xlu1 %172 }
 0x1f8   :  { %v175_v41 = vmul.f32 %v173_v39, %v170_v38 }
 0x1fa   :  { %v180_v42 = vadd.f32 %v179_v40, %v175_v41  ;;  %v328_v40 = vld [vmem:[#allocation2 + $0x6] sm:$0x3] }
 0x1fc   :  { %182 = vrot.lane.b32.xlu2 %v180_v42, %s902_s4 }
 0x256   :  { %v183_v43 = vpop.permute.xlu2 %182 }
 0x257   :  { %186 = vst.msk [vmem:[#allocation3] sm:$0x3] %vm185_vm6, %v183_v43  ;;  %743 = vmatmul.msk.f32.vlgmr.msra.gmra.mxu3 %vm70_vm0, %v183_v43 }
 0x258   :  { %483 = vmatpush.msra.mxu3 %v961_v1 }
 0x25a   :  { %484 = vmatpush.msra.mxu3 %v967_v3 }
 0x25c   :  { %485 = vmatpush.msra.mxu3 %v972_v5 }
 0x25e   :  { %486 = vmatpush.msra.mxu3 %v983_v9 }
 0x2da   :  { %v208_v44 = vpop.f32.mrf.mxu3 }
 0x2db   :  { %v231_v45 = vadd.f32 %v208_v44, %v1020_v12  ;;  %v211_v47 = vadd.f32 %v208_v44, %v188_v46 }
 0x2dd   :  { %233 = vrot.lane.b32.xlu0 %v231_v45, %s901_s27  ;;  %v744_v48 = vmul.f32 -1.442695, %v211_v47 }
 0x2df   :  { %776 = vpow2.f32 %v744_v48 }
 0x2e5   :  { %v777_v49 = vpop.eup %776 }
 0x2e6   :  { %v215_v50 = vadd.f32 1.0, %v777_v49 }
 0x2e8   :  { %778 = vrcp.f32 %v215_v50  ;;  %v227_v56 = vand.u32 2147483648, %v215_v50  ;;  %vm221_vm8 = vweird.f32 %v215_v50  ;;  %v225_v57 = vand.u32 2147483647, %v215_v50 }
 0x2ea   :  { %v228_v59 = vor.u32 1.1754944e-38, %v227_v56  ;;  %vm226_vm10 = vcmp.eq.f32.partialorder %v225_v57, 8.507059e+37 }
 0x2ee   :  { %v779_v51 = vpop.eup %778 }
 0x2ef   :  { %v217_v52 = vmul.f32 %v779_v51, %v215_v50  ;;  %vm222_vm7 = vweird.f32 %v779_v51 }
 0x2f0   :  { %vm223_vm9 = vmor %vm221_vm8, %vm222_vm7 }
 0x2f1   :  { %v218_v53 = vsub.f32 1.0, %v217_v52 }
 0x2f3   :  { %v219_v54 = vmul.f32 %v779_v51, %v218_v53 }
 0x2f5   :  { %v220_v55 = vadd.f32 %v779_v51, %v219_v54 }
 0x2f7   :  { %v224_v58 = vsel %vm223_vm9, %v779_v51, %v220_v55 }
 0x2f8   :  { %v229_v61 = vsel %vm226_vm10, %v228_v59, %v224_v58 }
 0x2f9   :  { %v243_v2 = vsub.f32 1.0, %v229_v61  ;;  %v249_v4 = vmul.f32 %v229_v61, %v180_v42 }
 0x34f   :  { %v234_v60 = vpop.permute.xlu0 %233 }
 0x350   :  { %v236_v62 = vmul.f32 %v234_v60, %v229_v61  ;;  %v61_v60 = vld [vmem:[%s1118_s0 + $0x8] sm:$0xff] }
 0x351   :  { %740 = vmatmul.msk.f32.gmra.mxu0 %vm70_vm0, %v61_v60 }
 0x352   :  { %238 = vrot.lane.b32.xlu1 %v236_v62, %s901_s27 }
 0x3c4   :  { %v239_v63 = vpop.permute.xlu1 %238 }
 0x3c5   :  { %v241_v0 = vadd.f32 %v239_v63, %v188_v46 }
 0x3c7   :  { %780 = vtanh.f32 %v241_v0 }
 0x3cd   :  { %v781_v1 = vpop.eup %780 }
 0x3ce   :  { %245 = vrot.lane.b32.xlu2 %v781_v1, %s902_s4 }
 0x428   :  { %v246_v3 = vpop.permute.xlu2 %245 }
 0x429   :  { %v248_v5 = vmul.f32 %v246_v3, %v243_v2  ;;  %v682_v2 = vld [vmem:[%s1124_s6 + $0x18] sm:$0xff]  ;;  %v681_v3 = vld [vmem:[%s1124_s6 + $0x10] sm:$0xff] }
 0x42a   :  { %705 = vmatpush.msrb.mxu2 %v682_v2 }
 0x42b   :  { %v250_v6 = vadd.f32 %v249_v4, %v248_v5  ;;  %v680_v4 = vld [vmem:[%s1124_s6 + $0x8] sm:$0xff]  ;;  %v679_v5 = vld [vmem:[%s1124_s6] sm:$0xff] }
 0x42c   :  { %706 = vmatpush.msrb.mxu2 %v681_v3 }
 0x42d   :  { %252 = vrot.lane.b32.xlu0 %v250_v6, %s902_s4 }
 0x42e   :  { %707 = vmatpush.msrb.mxu2 %v680_v4 }
 0x430   :  { %708 = vmatpush.msrb.mxu2 %v679_v5 }
 0x49f   :  { %v253_v7 = vpop.permute.xlu0 %252 }
 0x4a0   :  { %256 = vst.msk [vmem:[#allocation3 + $0x2] sm:$0x3] %vm185_vm6, %v253_v7  ;;  %745 = vmatmul.msk.f32.vlgmr.msrb.gmra.mxu3 %vm70_vm0, %v253_v7  ;;  %v97_v7 = vpop.f32.mrf.mxu0 }
 0x523   :  { %v278_v8 = vpop.f32.mrf.mxu3 }
 0x524   :  { %v301_v9 = vadd.f32 %v278_v8, %v1020_v12  ;;  %v281_v13 = vadd.f32 %v278_v8, %v258_v10  ;;  %v98_v8 = vadd.f32 %v1018_v11, %v97_v7 }
 0x526   :  { %303 = vrot.lane.b32.xlu1 %v301_v9, %s901_s27  ;;  %v746_v14 = vmul.f32 -1.442695, %v281_v13  ;;  %102 = vst.msk [vmem:[#allocation2 + $0x8] sm:$0xff] %vm100_vm1, %v98_v8 }
 0x528   :  { %782 = vpow2.f32 %v746_v14  ;;  %v1080_v14 = vld [vmem:[%s1125_s7] ss:$0 sm:$0xff]  ;;  %s903_s7 = smov [#allocation9]  }
 0x529   :  { %s723_s3 = sshll.u32 %s903_s7, 4  ;;  %s724_s3 = int_to_ptr.vmem [resolvable:$true] %s723_s3 }
 0x52d   :  { %v398_v11 = vld [vmem:[#allocation2 + $0x8] sm:$0x3]  ;;  %v538_v8 = vld [vmem:[#allocation2 + $0xc] sm:$0x3] }
 0x52e   :  { %v783_v15 = vpop.eup %782 }
 0x52f   :  { %v285_v16 = vadd.f32 1.0, %v783_v15 }
 0x531   :  { %784 = vrcp.f32 %v285_v16  ;;  %v297_v22 = vand.u32 2147483648, %v285_v16  ;;  %vm291_vm12 = vweird.f32 %v285_v16  ;;  %v295_v23 = vand.u32 2147483647, %v285_v16 }
 0x533   :  { %v298_v25 = vor.u32 1.1754944e-38, %v297_v22  ;;  %vm296_vm14 = vcmp.eq.f32.partialorder %v295_v23, 8.507059e+37 }
 0x537   :  { %v785_v17 = vpop.eup %784 }
 0x538   :  { %v287_v18 = vmul.f32 %v785_v17, %v285_v16  ;;  %vm292_vm11 = vweird.f32 %v785_v17 }
 0x539   :  { %vm293_vm13 = vmor %vm291_vm12, %vm292_vm11 }
 0x53a   :  { %v288_v19 = vsub.f32 1.0, %v287_v18 }
 0x53c   :  { %v289_v20 = vmul.f32 %v785_v17, %v288_v19 }
 0x53e   :  { %v290_v21 = vadd.f32 %v785_v17, %v289_v20 }
 0x540   :  { %v294_v24 = vsel %vm293_vm13, %v785_v17, %v290_v21 }
 0x541   :  { %v299_v27 = vsel %vm296_vm14, %v298_v25, %v294_v24 }
 0x542   :  { %v313_v32 = vsub.f32 1.0, %v299_v27  ;;  %v319_v34 = vmul.f32 %v299_v27, %v250_v6 }
 0x598   :  { %v304_v26 = vpop.permute.xlu1 %303 }
 0x599   :  { %v306_v28 = vmul.f32 %v304_v26, %v299_v27 }
 0x59b   :  { %308 = vrot.lane.b32.xlu2 %v306_v28, %s901_s27 }
 0x5f5   :  { %v309_v29 = vpop.permute.xlu2 %308 }
 0x5f6   :  { %v311_v30 = vadd.f32 %v309_v29, %v258_v10 }
 0x5f8   :  { %786 = vtanh.f32 %v311_v30 }
 0x5fe   :  { %v787_v31 = vpop.eup %786 }
 0x5ff   :  { %315 = vrot.lane.b32.xlu0 %v787_v31, %s902_s4 }
 0x671   :  { %v316_v33 = vpop.permute.xlu0 %315 }
 0x672   :  { %v318_v35 = vmul.f32 %v316_v33, %v313_v32 }
 0x674   :  { %v320_v36 = vadd.f32 %v319_v34, %v318_v35 }
 0x676   :  { %322 = vrot.lane.b32.xlu1 %v320_v36, %s902_s4 }
 0x6e8   :  { %v323_v37 = vpop.permute.xlu1 %322 }
 0x6e9   :  { %326 = vst.msk [vmem:[#allocation3 + $0x4] sm:$0x3] %vm185_vm6, %v323_v37  ;;  %747 = vmatmul.msk.f32.vlgmr.msrb.gmra.mxu1 %vm70_vm0, %v323_v37 }
 0x766   :  { %v348_v38 = vpop.f32.mrf.mxu1 }
 0x767   :  { %v371_v39 = vadd.f32 %v348_v38, %v1020_v12  ;;  %v351_v41 = vadd.f32 %v348_v38, %v328_v40 }
 0x769   :  { %373 = vrot.lane.b32.xlu2 %v371_v39, %s901_s27  ;;  %v748_v42 = vmul.f32 -1.442695, %v351_v41 }
 0x76b   :  { %788 = vpow2.f32 %v748_v42 }
 0x771   :  { %v789_v43 = vpop.eup %788 }
 0x772   :  { %v355_v44 = vadd.f32 1.0, %v789_v43 }
 0x774   :  { %790 = vrcp.f32 %v355_v44  ;;  %v367_v50 = vand.u32 2147483648, %v355_v44  ;;  %vm361_vm2 = vweird.f32 %v355_v44  ;;  %v365_v51 = vand.u32 2147483647, %v355_v44 }
 0x776   :  { %v368_v53 = vor.u32 1.1754944e-38, %v367_v50  ;;  %vm366_vm4 = vcmp.eq.f32.partialorder %v365_v51, 8.507059e+37 }
 0x77a   :  { %v791_v45 = vpop.eup %790 }
 0x77b   :  { %v357_v46 = vmul.f32 %v791_v45, %v355_v44  ;;  %vm362_vm15 = vweird.f32 %v791_v45  ;;  %v468_v44 = vld [vmem:[#allocation2 + $0xa] sm:$0x3] }
 0x77c   :  { %vm363_vm3 = vmor %vm361_vm2, %vm362_vm15 }
 0x77d   :  { %v358_v47 = vsub.f32 1.0, %v357_v46 }
 0x77f   :  { %v359_v48 = vmul.f32 %v791_v45, %v358_v47 }
 0x781   :  { %v360_v49 = vadd.f32 %v791_v45, %v359_v48 }
 0x783   :  { %v364_v52 = vsel %vm363_vm3, %v791_v45, %v360_v49 }
 0x784   :  { %v369_v55 = vsel %vm366_vm4, %v368_v53, %v364_v52 }
 0x785   :  { %v383_v61 = vsub.f32 1.0, %v369_v55  ;;  %v389_v63 = vmul.f32 %v369_v55, %v320_v36 }
 0x7c3   :  { %v374_v54 = vpop.permute.xlu2 %373 }
 0x7c4   :  { %v376_v56 = vmul.f32 %v374_v54, %v369_v55 }
 0x7c6   :  { %378 = vrot.lane.b32.xlu0 %v376_v56, %s901_s27 }
 0x838   :  { %v379_v57 = vpop.permute.xlu0 %378 }
 0x839   :  { %v381_v58 = vadd.f32 %v379_v57, %v328_v40 }
 0x83b   :  { %792 = vtanh.f32 %v381_v58 }
 0x841   :  { %v793_v59 = vpop.eup %792 }
 0x842   :  { %385 = vrot.lane.b32.xlu1 %v793_v59, %s902_s4 }
 0x8b4   :  { %v386_v62 = vpop.permute.xlu1 %385 }
 0x8b5   :  { %v388_v0 = vmul.f32 %v386_v62, %v383_v61 }
 0x8b7   :  { %v390_v1 = vadd.f32 %v389_v63, %v388_v0 }
 0x8b9   :  { %392 = vrot.lane.b32.xlu2 %v390_v1, %s902_s4 }
 0x913   :  { %v393_v6 = vpop.permute.xlu2 %392 }
 0x914   :  { %396 = vst.msk [vmem:[#allocation3 + $0x6] sm:$0x3] %vm185_vm6, %v393_v6  ;;  %749 = vmatmul.msk.f32.vlgmr.msra.gmra.mxu2 %vm70_vm0, %v393_v6 }
 0x91b   :  { %v677_v9 = vld [vmem:[#allocation3] sm:$0xff] }
 0x91c   :  { %757 = vmatmul.msk.f32.vlgmr.msrb.gmra.mxu2 %vm70_vm0, %v677_v9 }
 0x997   :  { %v418_v10 = vpop.f32.mrf.mxu2 }
 0x998   :  { %v441_v13 = vadd.f32 %v418_v10, %v1020_v12  ;;  %v421_v17 = vadd.f32 %v418_v10, %v398_v11 }
 0x99a   :  { %443 = vrot.lane.b32.xlu0 %v441_v13, %s901_s27  ;;  %v750_v18 = vmul.f32 -1.442695, %v421_v17 }
 0x99c   :  { %794 = vpow2.f32 %v750_v18 }
 0x99f   :  { %v710_v15 = vpop.f32.mrf.mxu2 }
 0x9a0   :  { %v711_v16 = vadd.f32 %v1080_v14, %v710_v15 }
 0x9a2   :  { %717 = vst.msk [vmem:[#allocation9] sm:$0xff] %vm716_vm5, %v711_v16  ;;  %v795_v19 = vpop.eup %794 }
 0x9a3   :  { %v425_v20 = vadd.f32 1.0, %v795_v19 }
 0x9a5   :  { %796 = vrcp.f32 %v425_v20  ;;  %v437_v26 = vand.u32 2147483648, %v425_v20  ;;  %vm431_vm7 = vweird.f32 %v425_v20  ;;  %v435_v27 = vand.u32 2147483647, %v425_v20 }
 0x9a7   :  { %v438_v29 = vor.u32 1.1754944e-38, %v437_v26  ;;  %vm436_vm9 = vcmp.eq.f32.partialorder %v435_v27, 8.507059e+37 }
 0x9ab   :  { %v797_v21 = vpop.eup %796 }
 0x9ac   :  { %v427_v22 = vmul.f32 %v797_v21, %v425_v20  ;;  %vm432_vm1 = vweird.f32 %v797_v21 }
 0x9ad   :  { %vm433_vm8 = vmor %vm431_vm7, %vm432_vm1 }
 0x9ae   :  { %v428_v23 = vsub.f32 1.0, %v427_v22 }
 0x9b0   :  { %v429_v24 = vmul.f32 %v797_v21, %v428_v23 }
 0x9b2   :  { %v430_v25 = vadd.f32 %v797_v21, %v429_v24 }
 0x9b4   :  { %v434_v28 = vsel %vm433_vm8, %v797_v21, %v430_v25 }
 0x9b5   :  { %v439_v31 = vsel %vm436_vm9, %v438_v29, %v434_v28 }
 0x9b6   :  { %v453_v36 = vsub.f32 1.0, %v439_v31  ;;  %v459_v38 = vmul.f32 %v439_v31, %v390_v1 }
 0xa0c   :  { %v444_v30 = vpop.permute.xlu0 %443 }
 0xa0d   :  { %v446_v32 = vmul.f32 %v444_v30, %v439_v31 }
 0xa0f   :  { %448 = vrot.lane.b32.xlu1 %v446_v32, %s901_s27 }
 0xa81   :  { %v449_v33 = vpop.permute.xlu1 %448 }
 0xa82   :  { %v451_v34 = vadd.f32 %v449_v33, %v398_v11 }
 0xa84   :  { %798 = vtanh.f32 %v451_v34 }
 0xa8a   :  { %v799_v35 = vpop.eup %798 }
 0xa8b   :  { %455 = vrot.lane.b32.xlu2 %v799_v35, %s902_s4 }
 0xae5   :  { %v456_v37 = vpop.permute.xlu2 %455 }
 0xae6   :  { %v458_v39 = vmul.f32 %v456_v37, %v453_v36 }
 0xae8   :  { %v460_v40 = vadd.f32 %v459_v38, %v458_v39  ;;  %v608_v38 = vld [vmem:[#allocation2 + $0xe] sm:$0x3] }
 0xaea   :  { %462 = vrot.lane.b32.xlu0 %v460_v40, %s902_s4 }
 0xb5c   :  { %v463_v41 = vpop.permute.xlu0 %462 }
 0xb5d   :  { %466 = vst.msk [vmem:[#allocation3 + $0x8] sm:$0x3] %vm185_vm6, %v463_v41  ;;  %751 = vmatmul.msk.f32.vlgmr.msra.gmra.mxu3 %vm70_vm0, %v463_v41 }
 0xbe0   :  { %v488_v42 = vpop.f32.mrf.mxu3 }
 0xbe1   :  { %v511_v43 = vadd.f32 %v488_v42, %v1020_v12  ;;  %v491_v45 = vadd.f32 %v488_v42, %v468_v44 }
 0xbe3   :  { %513 = vrot.lane.b32.xlu1 %v511_v43, %s901_s27  ;;  %v752_v46 = vmul.f32 -1.442695, %v491_v45 }
 0xbe5   :  { %800 = vpow2.f32 %v752_v46 }
 0xbeb   :  { %v801_v47 = vpop.eup %800 }
 0xbec   :  { %v495_v48 = vadd.f32 1.0, %v801_v47 }
 0xbee   :  { %802 = vrcp.f32 %v495_v48  ;;  %v507_v54 = vand.u32 2147483648, %v495_v48  ;;  %vm501_vm11 = vweird.f32 %v495_v48  ;;  %v505_v55 = vand.u32 2147483647, %v495_v48 }
 0xbf0   :  { %v508_v57 = vor.u32 1.1754944e-38, %v507_v54  ;;  %vm506_vm13 = vcmp.eq.f32.partialorder %v505_v55, 8.507059e+37 }
 0xbf4   :  { %v803_v49 = vpop.eup %802 }
 0xbf5   :  { %v497_v50 = vmul.f32 %v803_v49, %v495_v48  ;;  %vm502_vm10 = vweird.f32 %v803_v49 }
 0xbf6   :  { %vm503_vm12 = vmor %vm501_vm11, %vm502_vm10 }
 0xbf7   :  { %v498_v51 = vsub.f32 1.0, %v497_v50 }
 0xbf9   :  { %v499_v52 = vmul.f32 %v803_v49, %v498_v51 }
 0xbfb   :  { %v500_v53 = vadd.f32 %v803_v49, %v499_v52 }
 0xbfd   :  { %v504_v56 = vsel %vm503_vm12, %v803_v49, %v500_v53 }
 0xbfe   :  { %v509_v59 = vsel %vm506_vm13, %v508_v57, %v504_v56 }
 0xbff   :  { %v523_v0 = vsub.f32 1.0, %v509_v59  ;;  %v529_v2 = vmul.f32 %v509_v59, %v460_v40 }
 0xc55   :  { %v514_v58 = vpop.permute.xlu1 %513 }
 0xc56   :  { %v516_v60 = vmul.f32 %v514_v58, %v509_v59 }
 0xc58   :  { %518 = vrot.lane.b32.xlu2 %v516_v60, %s901_s27 }
 0xcb2   :  { %v519_v61 = vpop.permute.xlu2 %518 }
 0xcb3   :  { %v521_v62 = vadd.f32 %v519_v61, %v468_v44 }
 0xcb5   :  { %804 = vtanh.f32 %v521_v62 }
 0xcbb   :  { %v805_v63 = vpop.eup %804 }
 0xcbc   :  { %525 = vrot.lane.b32.xlu0 %v805_v63, %s902_s4 }
 0xd2e   :  { %v526_v1 = vpop.permute.xlu0 %525 }
 0xd2f   :  { %v528_v3 = vmul.f32 %v526_v1, %v523_v0 }
 0xd31   :  { %v530_v4 = vadd.f32 %v529_v2, %v528_v3 }
 0xd33   :  { %532 = vrot.lane.b32.xlu1 %v530_v4, %s902_s4 }
 0xda5   :  { %v533_v5 = vpop.permute.xlu1 %532 }
 0xda6   :  { %536 = vst.msk [vmem:[#allocation3 + $0xa] sm:$0x3] %vm185_vm6, %v533_v5  ;;  %753 = vmatmul.msk.f32.vlgmr.msrb.gmra.mxu0 %vm70_vm0, %v533_v5 }
 0xe23   :  { %v558_v6 = vpop.f32.mrf.mxu0 }
 0xe24   :  { %v581_v7 = vadd.f32 %v558_v6, %v1020_v12  ;;  %v561_v9 = vadd.f32 %v558_v6, %v538_v8 }
 0xe26   :  { %583 = vrot.lane.b32.xlu2 %v581_v7, %s901_s27  ;;  %v754_v10 = vmul.f32 -1.442695, %v561_v9 }
 0xe28   :  { %806 = vpow2.f32 %v754_v10 }
 0xe2e   :  { %v807_v13 = vpop.eup %806 }
 0xe2f   :  { %v565_v15 = vadd.f32 1.0, %v807_v13 }
 0xe31   :  { %808 = vrcp.f32 %v565_v15  ;;  %v577_v20 = vand.u32 2147483648, %v565_v15  ;;  %vm571_vm15 = vweird.f32 %v565_v15  ;;  %v575_v21 = vand.u32 2147483647, %v565_v15 }
 0xe33   :  { %v578_v23 = vor.u32 1.1754944e-38, %v577_v20  ;;  %vm576_vm3 = vcmp.eq.f32.partialorder %v575_v21, 8.507059e+37 }
 0xe37   :  { %v809_v16 = vpop.eup %808 }
 0xe38   :  { %v567_v11 = vmul.f32 %v809_v16, %v565_v15  ;;  %vm572_vm14 = vweird.f32 %v809_v16 }
 0xe39   :  { %vm573_vm2 = vmor %vm571_vm15, %vm572_vm14 }
 0xe3a   :  { %v568_v17 = vsub.f32 1.0, %v567_v11 }
 0xe3c   :  { %v569_v18 = vmul.f32 %v809_v16, %v568_v17 }
 0xe3e   :  { %v570_v19 = vadd.f32 %v809_v16, %v569_v18 }
 0xe40   :  { %v574_v22 = vsel %vm573_vm2, %v809_v16, %v570_v19 }
 0xe41   :  { %v579_v25 = vsel %vm576_vm3, %v578_v23, %v574_v22 }
 0xe42   :  { %v593_v30 = vsub.f32 1.0, %v579_v25  ;;  %v599_v32 = vmul.f32 %v579_v25, %v530_v4 }
 0xe80   :  { %v584_v24 = vpop.permute.xlu2 %583 }
 0xe81   :  { %v586_v26 = vmul.f32 %v584_v24, %v579_v25 }
 0xe83   :  { %588 = vrot.lane.b32.xlu0 %v586_v26, %s901_s27 }
 0xef5   :  { %v589_v27 = vpop.permute.xlu0 %588 }
 0xef6   :  { %v591_v28 = vadd.f32 %v589_v27, %v538_v8 }
 0xef8   :  { %810 = vtanh.f32 %v591_v28 }
 0xefe   :  { %v811_v29 = vpop.eup %810 }
 0xeff   :  { %595 = vrot.lane.b32.xlu1 %v811_v29, %s902_s4 }
 0xf71   :  { %v596_v31 = vpop.permute.xlu1 %595 }
 0xf72   :  { %v598_v33 = vmul.f32 %v596_v31, %v593_v30 }
 0xf74   :  { %v600_v34 = vadd.f32 %v599_v32, %v598_v33 }
 0xf76   :  { %602 = vrot.lane.b32.xlu2 %v600_v34, %s902_s4 }
 0xfd0   :  { %v603_v35 = vpop.permute.xlu2 %602 }
 0xfd1   :  { %606 = vst.msk [vmem:[#allocation3 + $0xc] sm:$0x3] %vm185_vm6, %v603_v35  ;;  %755 = vmatmul.msk.f32.vlgmr.msra.gmra.mxu1 %vm70_vm0, %v603_v35 }
0x104e   :  { %v628_v36 = vpop.f32.mrf.mxu1 }
0x104f   :  { %v651_v37 = vadd.f32 %v628_v36, %v1020_v12  ;;  %v631_v39 = vadd.f32 %v628_v36, %v608_v38 }
0x1051   :  { %653 = vrot.lane.b32.xlu0 %v651_v37, %s901_s27  ;;  %v756_v40 = vmul.f32 -1.442695, %v631_v39 }
0x1053   :  { %812 = vpow2.f32 %v756_v40 }
0x1059   :  { %v813_v41 = vpop.eup %812 }
0x105a   :  { %v635_v42 = vadd.f32 1.0, %v813_v41 }
0x105c   :  { %814 = vrcp.f32 %v635_v42  ;;  %v647_v48 = vand.u32 2147483648, %v635_v42  ;;  %vm641_vm1 = vweird.f32 %v635_v42  ;;  %v645_v49 = vand.u32 2147483647, %v635_v42 }
0x105e   :  { %v648_v50 = vor.u32 1.1754944e-38, %v647_v48  ;;  %vm646_vm8 = vcmp.eq.f32.partialorder %v645_v49, 8.507059e+37 }
0x1062   :  { %v815_v43 = vpop.eup %814 }
0x1063   :  { %v637_v44 = vmul.f32 %v815_v43, %v635_v42  ;;  %vm642_vm4 = vweird.f32 %v815_v43 }
0x1064   :  { %vm643_vm7 = vmor %vm641_vm1, %vm642_vm4 }
0x1065   :  { %v638_v45 = vsub.f32 1.0, %v637_v44 }
0x1067   :  { %v639_v46 = vmul.f32 %v815_v43, %v638_v45 }
0x1069   :  { %v640_v47 = vadd.f32 %v815_v43, %v639_v46 }
0x106b   :  { %v644_v12 = vsel %vm643_vm7, %v815_v43, %v640_v47 }
0x106c   :  { %v649_v52 = vsel %vm646_vm8, %v648_v50, %v644_v12 }
0x106d   :  { %v663_v57 = vsub.f32 1.0, %v649_v52  ;;  %v669_v59 = vmul.f32 %v649_v52, %v600_v34 }
0x10c3   :  { %v654_v51 = vpop.permute.xlu0 %653 }
0x10c4   :  { %v656_v53 = vmul.f32 %v654_v51, %v649_v52 }
0x10c6   :  { %658 = vrot.lane.b32.xlu1 %v656_v53, %s901_s27 }
0x1138   :  { %v659_v54 = vpop.permute.xlu1 %658 }
0x1139   :  { %v661_v55 = vadd.f32 %v659_v54, %v608_v38 }
0x113b   :  { %816 = vtanh.f32 %v661_v55 }
0x1141   :  { %v817_v56 = vpop.eup %816 }
0x1142   :  { %665 = vrot.lane.b32.xlu2 %v817_v56, %s902_s4 }
0x119c   :  { %v666_v58 = vpop.permute.xlu2 %665 }
0x119d   :  { %v668_v60 = vmul.f32 %v666_v58, %v663_v57 }
0x119f   :  { %v670_v61 = vadd.f32 %v669_v59, %v668_v60 }
0x11a1   :  { %672 = vrot.lane.b32.xlu0 %v670_v61, %s902_s4 }
0x1213   :  { %v673_v62 = vpop.permute.xlu0 %672 }
0x1214   :  { %676 = vst.msk [vmem:[#allocation3 + $0xe] sm:$0x3] %vm185_vm6, %v673_v62 }
0x121b   :  { %v678_v63 = vld [vmem:[#allocation3 + $0x8] sm:$0xff] }
0x121c   :  { %758 = vmatmul.msk.f32.gmra.mxu2 %vm70_vm0, %v678_v63 }
0x129f   :  { %v713_v0 = vpop.f32.mrf.mxu2 }
0x12a0   :  { %v714_v1 = vadd.f32 %v1080_v14, %v713_v0 }
0x12a2   :  { %718 = vst.msk [vmem:[#allocation9 + $0x8] sm:$0xff] %vm716_vm5, %v714_v1 }
0x12a3   :  { %731 = dma.vmem_to_hbm [thread:$0]  %s724_s3, 256, %s726_s20, [#allocation6], %s898_s15, %s898_s15, %s899_s16  }
0x12a4   :  { %894 = dma.done.wait [#allocation6], 256  }
0x12a5   :  { %895 = vsyncadd [#allocation6], 4294967040 }
0x12a6   :  { %736 = vsyncpa [#allocation5], 1 }
0x12a7   :  { %737 = vsyncpa [#allocation8], 1 }
0x12a8   :  { %738 = vsyncpa [#allocation6], 1 }

</bundles_post_ra>
